<compile_context>
chip_gen: v6e
topology: v6e:2x2x1
jax: 0.10.0
libtpu: 0.0.40
codegen_flags: <defaults>
</compile_context>

<pallas_src>
import functools
import math

import jax
import jax.numpy as jnp
from jax.experimental import pallas as pl
from jax.experimental.pallas import tpu as pltpu

LN_EPS = 1e-5
MASK_BIAS = -1e30  # finite "-inf": identical softmax result, robust to all-masked rows
NEG_INF = float("-inf")


# ---------------------------------------------------------------------------
# Chip-aware sizing helpers.
# ---------------------------------------------------------------------------
@functools.lru_cache(maxsize=1)
def _vmem_capacity_bytes():
    try:
        info = pltpu.get_tpu_info()
        cap = getattr(info, "vmem_capacity_bytes", None)
        if cap:
            return int(cap)
    except Exception:
        pass
    return 128 * 1024 * 1024  # v5e / v6e default


def _mosaic_params(dimension_semantics, vmem_need_bytes):
    cap = _vmem_capacity_bytes()
    limit = int(min(max(2 * vmem_need_bytes + (8 << 20), 32 << 20), int(cap * 0.9)))
    return pltpu.CompilerParams(dimension_semantics=dimension_semantics,
                                vmem_limit_bytes=limit)


def _row_tile(n_rows):
    # 512-row tiles on 128 MiB VMEM chips (v5e/v6e), 256 on 64 MiB v7x.
    target = 512 if _vmem_capacity_bytes() >= (96 << 20) else 256
    return min(n_rows, target)


def _seq_tile(seq):
    # Prefer multiples of 256 (full MXU M/N on v6e/v7x), then 128 (v5e MXU width).
    for t in (256, 128):
        if seq % t == 0:
            return t
    return seq  # small/odd sequence: single tile (kv padding would corrupt softmax)


def _const_spec(shape):
    # Constant-index weight/bias block: revisited every grid step, so a second
    # pipeline buffer is pure VMEM waste -> Buffered(1).
    return pl.BlockSpec(shape, lambda *_: (0,) * len(shape),
                        pipeline_mode=pl.Buffered(1))


def _layernorm_f32(x, gamma, beta, eps=LN_EPS):
    mu = jnp.mean(x, axis=-1, keepdims=True)
    var = jnp.mean((x - mu) ** 2, axis=-1, keepdims=True)
    return (x - mu) * jax.lax.rsqrt(var + eps) * gamma + beta


# ---------------------------------------------------------------------------
# Kernel 1: fused Q/K/V projection, single (R, E) @ (E, 3E) bf16 matmul.
# q is stored pre-scaled by 1/sqrt(head_dim); q/k/v outputs are bf16.
# ---------------------------------------------------------------------------
def _qkv_kernel(x_ref, w_ref, b_ref, q_ref, k_ref, v_ref, *, embed, scale):
    x = x_ref[...].astype(jnp.bfloat16)                           # (tm, E)
    qkv = jnp.dot(x, w_ref[...],                                  # w is bf16 (E, 3E)
                  preferred_element_type=jnp.float32) + b_ref[...]
    q_ref[...] = (qkv[:, :embed] * scale).astype(jnp.bfloat16)
    k_ref[...] = qkv[:, embed:2 * embed].astype(jnp.bfloat16)
    v_ref[...] = qkv[:, 2 * embed:].astype(jnp.bfloat16)


def qkv_proj(x2d, wqkv_bf16, bqkv, embed, scale):
    R, E = x2d.shape
    tm = _row_tile(R)
    row_spec = pl.BlockSpec((tm, E), lambda i: (i, 0))
    out = jax.ShapeDtypeStruct((R, E), jnp.bfloat16)
    vmem_need = (tm * E * 4 * 2                 # x block (f32, double-buffered)
                 + E * 3 * E * 2                # wqkv bf16 (single buffer)
                 + 3 * E * 4                    # bias
                 + 3 * tm * E * 2 * 2)          # q/k/v bf16 outputs, double-buffered
    return pl.pallas_call(
        functools.partial(_qkv_kernel, embed=embed, scale=scale),
        grid=(pl.cdiv(R, tm),),
        in_specs=[row_spec,
                  _const_spec((E, 3 * E)),
                  _const_spec((1, 3 * E))],
        out_specs=[row_spec, row_spec, row_spec],
        out_shape=[out, out, out],
        compiler_params=_mosaic_params(("parallel",), vmem_need),
    )(x2d, wqkv_bf16, bqkv)


# ---------------------------------------------------------------------------
# Kernel 2: flash-style scaled dot-product attention.
# Grid = (batch, q-tile, kv-tile); online softmax accumulated in VMEM scratch.
# ---------------------------------------------------------------------------
def _sdpa_flash_kernel(q_ref, k_ref, v_ref, bias_ref, o_ref, m_sc, l_sc, acc_sc):
    kv = pl.program_id(2)

    @pl.when(kv == 0)
    def _():
        m_sc[...] = jnp.full_like(m_sc, -jnp.inf)
        l_sc[...] = jnp.zeros_like(l_sc)
        acc_sc[...] = jnp.zeros_like(acc_sc)

    q = q_ref[...]                                 # (H, tq, hd) bf16, pre-scaled
    k = k_ref[...]                                 # (H, tkv, hd) bf16
    v = v_ref[...]                                 # (H, tkv, hd) bf16
    # Batched per-head score matmul contracting hd (no explicit K transpose / XLU).
    s = jnp.einsum("hqd,hkd->hqk", q, k,
                   preferred_element_type=jnp.float32)            # (H, tq, tkv) f32
    s = s + bias_ref[...]                          # (1, tkv) additive mask bias

    m_new = jnp.maximum(m_sc[...], jnp.max(s, axis=-1, keepdims=True))
    alpha = jnp.exp(m_sc[...] - m_new)
    p = jnp.exp(s - m_new)
    l_sc[...] = alpha * l_sc[...] + jnp.sum(p, axis=-1, keepdims=True)
    # Dropout(p=0.1) on attention weights: identity in eval mode.
    acc_sc[...] = alpha * acc_sc[...] + jnp.einsum(
        "hqk,hkd->hqd", p.astype(jnp.bfloat16), v,
        preferred_element_type=jnp.float32)
    m_sc[...] = m_new

    @pl.when(kv == pl.num_programs(2) - 1)
    def _():
        o_ref[...] = (acc_sc[...] *
                      pl.reciprocal(l_sc[...], approx=True)).astype(o_ref.dtype)


def sdpa(q, k, v, bias):
    B, H, Sq, hd = q.shape
    Skv = k.shape[2]
    tq = _seq_tile(Sq)
    tkv = _seq_tile(Skv)
    q_spec = pl.BlockSpec((None, H, tq, hd), lambda b, qi, kv: (b, 0, qi, 0))
    kv_spec = pl.BlockSpec((None, H, tkv, hd), lambda b, qi, kv: (b, 0, kv, 0))
    b_spec = pl.BlockSpec((None, 1, tkv), lambda b, qi, kv: (b, 0, kv))
    o_spec = pl.BlockSpec((None, H, tq, hd), lambda b, qi, kv: (b, 0, qi, 0))
    vmem_need = (H * tq * hd * 2 * 2               # q (bf16, double-buffered)
                 + 2 * H * tkv * hd * 2 * 2        # k, v
                 + tkv * 4 * 2                     # bias
                 + H * tq * hd * 2 * 2             # out (bf16)
                 + 2 * H * tq * 4                  # m, l scratch
                 + H * tq * hd * 4                 # acc scratch
                 + H * tq * tkv * 4)               # score tile (internal)
    return pl.pallas_call(
        _sdpa_flash_kernel,
        grid=(B, Sq // tq, Skv // tkv),
        in_specs=[q_spec, kv_spec, kv_spec, b_spec],
        out_specs=o_spec,
        out_shape=jax.ShapeDtypeStruct((B, H, Sq, hd), jnp.bfloat16),
        scratch_shapes=[pltpu.VMEM((H, tq, 1), jnp.float32),
                        pltpu.VMEM((H, tq, 1), jnp.float32),
                        pltpu.VMEM((H, tq, hd), jnp.float32)],
        compiler_params=_mosaic_params(("parallel", "parallel", "arbitrary"),
                                       vmem_need),
    )(q, k, v, bias)


# ---------------------------------------------------------------------------
# Kernel 3: output proj + residual + LN1 + FeedForward + residual + LN2 (row-wise).
# ---------------------------------------------------------------------------
def _post_kernel(attn_ref, x_ref,
                 wp_ref, bp_ref, g1_ref, be1_ref,
                 w1_ref, b1_ref, w2_ref, b2_ref,
                 g2_ref, be2_ref, o_ref):
    a = attn_ref[...]                                             # (tm, E) bf16
    proj = jnp.dot(a, wp_ref[...],
                   preferred_element_type=jnp.float32) + bp_ref[...]
    # dropout(proj) is identity in eval mode
    h = _layernorm_f32(proj + x_ref[...], g1_ref[...], be1_ref[...])
    hid = jnp.dot(h.astype(jnp.bfloat16), w1_ref[...],
                  preferred_element_type=jnp.float32) + b1_ref[...]
    hid = jnp.maximum(hid, 0.0)
    # dropout inside FF is identity in eval mode
    ff = jnp.dot(hid.astype(jnp.bfloat16), w2_ref[...],
                 preferred_element_type=jnp.float32) + b2_ref[...]
    o_ref[...] = _layernorm_f32(ff + h, g2_ref[...], be2_ref[...])


def post_attention(attn2d, x2d, prepped):
    R, E = x2d.shape
    d_ff = prepped["w1_bf16"].shape[1]
    tm = _row_tile(R)
    attn_spec = pl.BlockSpec((tm, E), lambda i: (i, 0))
    x_spec = pl.BlockSpec((tm, E), lambda i: (i, 0))
    out_spec = pl.BlockSpec((tm, E), lambda i: (i, 0))
    vmem_need = (tm * E * 2 * 2                    # attn (bf16, double-buffered)
                 + tm * E * 4 * 2                  # x residual (f32)
                 + E * E * 2                       # wp (bf16, single buffer)
                 + 2 * E * d_ff * 2                # w1 + w2
                 + (6 * E + d_ff) * 4              # biases + LN params
                 + tm * E * 4 * 2                  # output (f32)
                 + tm * d_ff * 4)                  # FF hidden tile (internal)
    return pl.pallas_call(
        _post_kernel,
        grid=(pl.cdiv(R, tm),),
        in_specs=[attn_spec, x_spec,
                  _const_spec((E, E)), _const_spec((1, E)),
                  _const_spec((1, E)), _const_spec((1, E)),
                  _const_spec((E, d_ff)), _const_spec((1, d_ff)),
                  _const_spec((d_ff, E)), _const_spec((1, E)),
                  _const_spec((1, E)), _const_spec((1, E))],
        out_specs=out_spec,
        out_shape=jax.ShapeDtypeStruct((R, E), jnp.float32),
        compiler_params=_mosaic_params(("parallel",), vmem_need),
    )(attn2d, x2d,
      prepped["wp_bf16"], prepped["bp"], prepped["ln1_g"], prepped["ln1_b"],
      prepped["w1_bf16"], prepped["b1"], prepped["w2_bf16"], prepped["b2"],
      prepped["ln2_g"], prepped["ln2_b"])


# ---------------------------------------------------------------------------
# One-time weight preparation (hoisted out of the per-call forward).
# ---------------------------------------------------------------------------
def prepare_encoder_params(params):
    prepped = dict(params)
    prepped["wqkv_bf16"] = jnp.concatenate(
        [params["wq"], params["wk"], params["wv"]], axis=1).astype(jnp.bfloat16)
    prepped["bqkv"] = jnp.concatenate(
        [params["bq"], params["bk"], params["bv"]], axis=1)
    prepped["wp_bf16"] = params["wp"].astype(jnp.bfloat16)
    prepped["w1_bf16"] = params["w1"].astype(jnp.bfloat16)
    prepped["w2_bf16"] = params["w2"].astype(jnp.bfloat16)
    return prepped


# ---------------------------------------------------------------------------
# EncoderBlock forward (glue: free HBM-level reshapes matching torch .view()).
# ---------------------------------------------------------------------------
def encoder_block(x, mask, prepped, n_heads):
    B, S, E = x.shape
    hd = E // n_heads

    x2d = jnp.reshape(x, (B * S, E))
    q, k, v = qkv_proj(x2d, prepped["wqkv_bf16"], prepped["bqkv"], E,
                       scale=1.0 / math.sqrt(hd))

    # Exact torch semantics: .view(B, H, S, hd) on the contiguous (B, S, E) tensor
    # (raw reshape, NOT a transpose-split). Free metadata ops on contiguous arrays.
    q = jnp.reshape(q, (B, n_heads, S, hd))
    k = jnp.reshape(k, (B, n_heads, S, hd))
    v = jnp.reshape(v, (B, n_heads, S, hd))

    # Additive f32 mask bias ((B,1,S) -> tiny op; heavy weight prep is hoisted).
    bias = jnp.where(mask == 0, jnp.float32(MASK_BIAS), jnp.float32(0.0))

    attn = sdpa(q, k, v, bias)                    # (B, H, S, hd) bf16
    attn2d = jnp.reshape(attn, (B * S, E))        # torch .view(B, S, E), flattened
    out2d = post_attention(attn2d, x2d, prepped)
    return jnp.reshape(out2d, (B, S, E))


# ---------------------------------------------------------------------------
# References for validation.
# ---------------------------------------------------------------------------
def encoder_block_ref_f32(x, mask, params, n_heads):
    """Pure-f32 mirror of the PyTorch forward (eval mode)."""
    B, S, E = x.shape
    hd = E // n_heads

    def lin(t, w, b):
        return t @ w + b

    def ln(t, g, b):
        mu = jnp.mean(t, axis=-1, keepdims=True)
        var = jnp.mean((t - mu) ** 2, axis=-1, keepdims=True)
        return (t - mu) / jnp.sqrt(var + LN_EPS) * g + b

    q = lin(x, params["wq"], params["bq"]).reshape(B, n_heads, S, hd)
    k = lin(x, params["wk"], params["bk"]).reshape(B, n_heads, S, hd)
    v = lin(x, params["wv"], params["bv"]).reshape(B, n_heads, S, hd)
    scores = jnp.einsum("bhqd,bhkd->bhqk", q, k) / (hd ** 0.5)
    scores = jnp.where(mask[:, None] == 0, NEG_INF, scores)
    p = jax.nn.softmax(scores, axis=-1)
    attn = jnp.einsum("bhqk,bhkd->bhqd", p, v).reshape(B, S, E)
    h = ln(lin(attn, params["wp"], params["bp"]) + x, params["ln1_g"], params["ln1_b"])
    ff = lin(jnp.maximum(lin(h, params["w1"], params["b1"]), 0.0),
             params["w2"], params["b2"])
    return ln(ff + h, params["ln2_g"], params["ln2_b"])


def encoder_block_ref_matched(x, mask, params, n_heads):
    """Same math as the kernels (bf16 matmul operands, f32 accumulation/softmax/LN)."""
    B, S, E = x.shape
    hd = E // n_heads
    bf16 = jnp.bfloat16

    def mm(a, b):
        return jnp.dot(a.astype(bf16), b.astype(bf16),
                       preferred_element_type=jnp.float32)

    def ln(t, g, b):
        mu = jnp.mean(t, axis=-1, keepdims=True)
        var = jnp.mean((t - mu) ** 2, axis=-1, keepdims=True)
        return (t - mu) * jax.lax.rsqrt(var + LN_EPS) * g + b

    q = (mm(x, params["wq"]) + params["bq"]).reshape(B, n_heads, S, hd)
    k = (mm(x, params["wk"]) + params["bk"]).reshape(B, n_heads, S, hd)
    v = (mm(x, params["wv"]) + params["bv"]).reshape(B, n_heads, S, hd)
    scale = 1.0 / math.sqrt(hd)
    s = jnp.einsum("bhqd,bhkd->bhqk", (q * scale).astype(bf16), k.astype(bf16),
                   preferred_element_type=jnp.float32)
    bias = jnp.where(mask[:, None] == 0, jnp.float32(MASK_BIAS), jnp.float32(0.0))
    p = jax.nn.softmax(s + bias, axis=-1)
    attn = jnp.einsum("bhqk,bhkd->bhqd", p.astype(bf16), v.astype(bf16),
                      preferred_element_type=jnp.float32).reshape(B, S, E)
    h = ln(mm(attn, params["wp"]) + params["bp"] + x,
           params["ln1_g"], params["ln1_b"])
    hid = jnp.maximum(mm(h, params["w1"]) + params["b1"], 0.0)
    ff = mm(hid, params["w2"]) + params["b2"]
    return ln(ff + h, params["ln2_g"], params["ln2_b"])


# ---------------------------------------------------------------------------
def init_params(key, embed_size, d_ff):
    ks = jax.random.split(key, 16)
    s = 1.0 / math.sqrt(embed_size)

    def w(k, shape, scale):
        return jax.random.normal(k, shape, jnp.float32) * scale

    return {
        "wq": w(ks[0], (embed_size, embed_size), s),
        "bq": w(ks[1], (1, embed_size), 0.02),
        "wk": w(ks[2], (embed_size, embed_size), s),
        "bk": w(ks[3], (1, embed_size), 0.02),
        "wv": w(ks[4], (embed_size, embed_size), s),
        "bv": w(ks[5], (1, embed_size), 0.02),
        "wp": w(ks[6], (embed_size, embed_size), s),
        "bp": w(ks[7], (1, embed_size), 0.02),
        "w1": w(ks[8], (embed_size, d_ff), s),
        "b1": w(ks[9], (1, d_ff), 0.02),
        "w2": w(ks[10], (d_ff, embed_size), 1.0 / math.sqrt(d_ff)),
        "b2": w(ks[11], (1, embed_size), 0.02),
        "ln1_g": 1.0 + w(ks[12], (1, embed_size), 0.05),
        "ln1_b": w(ks[13], (1, embed_size), 0.05),
        "ln2_g": 1.0 + w(ks[14], (1, embed_size), 0.05),
        "ln2_b": w(ks[15], (1, embed_size), 0.05),
    }


if __name__ == "__main__":
    B, S, E, H, D_FF = 2, 8, 32, 4, 64

    key = jax.random.PRNGKey(0)
    kx, kp = jax.random.split(key)
    x = jax.random.normal(kx, (B, S, E), jnp.float32)
    params = init_params(kp, E, D_FF)
    prepped = prepare_encoder_params(params)   # one-time weight prep (hoisted)

    # mask: (B, 1, S_kv); zeros = masked-out key positions (last 2 keys of batch 1).
    mask = jnp.ones((B, 1, S), jnp.int32)
    mask = mask.at[1, 0, -2:].set(0)

    out = encoder_block(x, mask, prepped, H)
    out = jax.block_until_ready(out)
    assert out.shape == (B, S, E)
    assert bool(jnp.all(jnp.isfinite(out)))

    # Primary check: kernels vs. a reference with identical mixed precision
    # (divergence = EUP approx reciprocal + bf16 round of the attn intermediate).
    ref_m = encoder_block_ref_matched(x, mask, params, H)
    err_m = float(jnp.max(jnp.abs(out - ref_m)))
    assert jnp.allclose(out, ref_m, rtol=2e-2, atol=2e-2), err_m

    # Sanity check vs. the pure-f32 PyTorch-equivalent reference; tolerance reflects
    # bf16 matmul operands (per TPU perf guidance), not a semantic difference.
    ref_f = encoder_block_ref_f32(x, mask, params, H)
    assert float(jnp.max(jnp.abs(out - ref_f))) < 0.1

    print("KERNEL_OK")
</pallas_src>

<mosaic_0001>
module attributes {stable_mosaic.version = 11 : i64} {
  func.func @_qkv_kernel(%arg0: i32, %arg1: memref<16x32xf32, #tpu.memory_space<vmem>>, %arg2: memref<32x96xbf16, #tpu.memory_space<vmem>>, %arg3: memref<1x96xf32, #tpu.memory_space<vmem>>, %arg4: memref<16x32xbf16, #tpu.memory_space<vmem>>, %arg5: memref<16x32xbf16, #tpu.memory_space<vmem>>, %arg6: memref<16x32xbf16, #tpu.memory_space<vmem>>) attributes {dimension_semantics = [#tpu.dimension_semantics<parallel>], iteration_bounds = array<i64: 1>, scalar_prefetch = 0 : i64, scratch_operands = 0 : i64, tpu.core_type = #tpu.core_type<tc>, window_params = [{transform_indices = @transform_0, window_bounds = array<i64: 16, 32>}, {pipeline_mode = #tpu.pipeline_mode<synchronous>, transform_indices = @transform_1, window_bounds = array<i64: 32, 96>}, {pipeline_mode = #tpu.pipeline_mode<synchronous>, transform_indices = @transform_2, window_bounds = array<i64: 1, 96>}, {transform_indices = @transform_3, window_bounds = array<i64: 16, 32>}, {transform_indices = @transform_4, window_bounds = array<i64: 16, 32>}, {transform_indices = @transform_5, window_bounds = array<i64: 16, 32>}]} {
    %c0 = arith.constant 0 : index
    %c0_0 = arith.constant 0 : index
    %0 = vector.load %arg1[%c0, %c0_0] : memref<16x32xf32, #tpu.memory_space<vmem>>, vector<16x32xf32>
    %1 = arith.truncf %0 : vector<16x32xf32> to vector<16x32xbf16>
    %c0_1 = arith.constant 0 : index
    %c0_2 = arith.constant 0 : index
    %2 = vector.load %arg2[%c0_1, %c0_2] : memref<32x96xbf16, #tpu.memory_space<vmem>>, vector<32x96xbf16>
    %cst = arith.constant dense<0.000000e+00> : vector<16x96xf32>
    %3 = tpu.matmul %1, %2, %cst {dimension_numbers = #tpu.dot_dimension_numbers<[1], [0], [0], [1], [0, 0, 1, 1], [], []>} : vector<16x32xbf16>, vector<32x96xbf16>, vector<16x96xf32> -> vector<16x96xf32>
    %c0_3 = arith.constant 0 : index
    %c0_4 = arith.constant 0 : index
    %4 = vector.load %arg3[%c0_3, %c0_4] : memref<1x96xf32, #tpu.memory_space<vmem>>, vector<1x96xf32>
    %5 = vector.broadcast %4 : vector<1x96xf32> to vector<16x96xf32>
    %6 = arith.addf %3, %5 : vector<16x96xf32>
    %7 = vector.extract_strided_slice %6 {offsets = [0, 0], sizes = [16, 32], strides = [1, 1]} : vector<16x96xf32> to vector<16x32xf32>
    %cst_5 = arith.constant 0.353553385 : f32
    %8 = vector.broadcast %cst_5 : f32 to vector<16x32xf32>
    %9 = arith.mulf %7, %8 : vector<16x32xf32>
    %10 = arith.truncf %9 : vector<16x32xf32> to vector<16x32xbf16>
    %c0_6 = arith.constant 0 : index
    %c0_7 = arith.constant 0 : index
    %11 = vector.load %arg4[%c0_6, %c0_7] : memref<16x32xbf16, #tpu.memory_space<vmem>>, vector<16x32xbf16>
    tpu.vector_store %arg4[%c0_6, %c0_7], %10 {strides = array<i32>} : memref<16x32xbf16, #tpu.memory_space<vmem>>, vector<16x32xbf16>,
    %12 = vector.extract_strided_slice %6 {offsets = [0, 32], sizes = [16, 32], strides = [1, 1]} : vector<16x96xf32> to vector<16x32xf32>
    %13 = arith.truncf %12 : vector<16x32xf32> to vector<16x32xbf16>
    %c0_8 = arith.constant 0 : index
    %c0_9 = arith.constant 0 : index
    %14 = vector.load %arg5[%c0_8, %c0_9] : memref<16x32xbf16, #tpu.memory_space<vmem>>, vector<16x32xbf16>
    tpu.vector_store %arg5[%c0_8, %c0_9], %13 {strides = array<i32>} : memref<16x32xbf16, #tpu.memory_space<vmem>>, vector<16x32xbf16>,
    %15 = vector.extract_strided_slice %6 {offsets = [0, 64], sizes = [16, 32], strides = [1, 1]} : vector<16x96xf32> to vector<16x32xf32>
    %16 = arith.truncf %15 : vector<16x32xf32> to vector<16x32xbf16>
    %c0_10 = arith.constant 0 : index
    %c0_11 = arith.constant 0 : index
    %17 = vector.load %arg6[%c0_10, %c0_11] : memref<16x32xbf16, #tpu.memory_space<vmem>>, vector<16x32xbf16>
    tpu.vector_store %arg6[%c0_10, %c0_11], %16 {strides = array<i32>} : memref<16x32xbf16, #tpu.memory_space<vmem>>, vector<16x32xbf16>,
    return
  }
  func.func @transform_0(%arg0: i32) -> (i32, i32) {
    %c0_i32 = arith.constant 0 : i32
    %c0_i32_0 = arith.constant 0 : i32
    return %arg0, %c0_i32 : i32, i32
  }
  func.func @transform_1(%arg0: i32) -> (i32, i32) {
    %c0_i32 = arith.constant 0 : i32
    %c0_i32_0 = arith.constant 0 : i32
    %c0_i32_1 = arith.constant 0 : i32
    return %c0_i32, %c0_i32_0 : i32, i32
  }
  func.func @transform_2(%arg0: i32) -> (i32, i32) {
    %c0_i32 = arith.constant 0 : i32
    %c0_i32_0 = arith.constant 0 : i32
    %c0_i32_1 = arith.constant 0 : i32
    return %c0_i32, %c0_i32_0 : i32, i32
  }
  func.func @transform_3(%arg0: i32) -> (i32, i32) {
    %c0_i32 = arith.constant 0 : i32
    %c0_i32_0 = arith.constant 0 : i32
    return %arg0, %c0_i32 : i32, i32
  }
  func.func @transform_4(%arg0: i32) -> (i32, i32) {
    %c0_i32 = arith.constant 0 : i32
    %c0_i32_0 = arith.constant 0 : i32
    return %arg0, %c0_i32 : i32, i32
  }
  func.func @transform_5(%arg0: i32) -> (i32, i32) {
    %c0_i32 = arith.constant 0 : i32
    %c0_i32_0 = arith.constant 0 : i32
    return %arg0, %c0_i32 : i32, i32
  }
}

</mosaic_0001>

<bundles_post_ra>
// kernel: tpu_custom_call.1
= control target key start
LH: loop header
LB: loop body
LE: loop exit
PB: predicated region body
PF: predicated region fallthrough
CT: control target
= control target key end

     0   :  { %11 = vsyncpa [#allocation3], 0  ;;  %s428_s0 = inlined_call_operand.hbm [shape: f32[16,32], index: 0, kind: input, shape index: {}]   ;;  %s429_s1 = inlined_call_operand.hbm [shape: bf16[32,96], index: 1, kind: input, shape index: {}]   ;;  %s430_s2 = inlined_call_operand.vmem [shape: f32[1,96], index: 2, kind: input, shape index: {}]   ;;  %s431_s3 = inlined_call_operand.hbm [shape: bf16[16,32], index: 3, kind: output, shape index: {0}]   ;;  %s432_s4 = inlined_call_operand.hbm [shape: bf16[16,32], index: 4, kind: output, shape index: {1}]   ;;  %s433_s5 = inlined_call_operand.hbm [shape: bf16[16,32], index: 5, kind: output, shape index: {2}]  }
   0x1   :  { %12 = vsyncpa [#allocation6], 0 }
   0x2   :  { %13 = vsyncpa [#allocation4], 0 }
   0x3   :  { %14 = vsyncpa [#allocation9], 0  ;;  %s348_s18 = smov [#allocation2]  }
   0x4   :  { %s20_s19 = sshll.u32 %s348_s18, 4  ;;  %s21_s19 = int_to_ptr.vmem [resolvable:$true] %s20_s19 }
   0x5   :  { %s248_s20 = scalar_lea.vmem %s21_s19, 256  ;;  %p253_p1 = scmp.lt.s32.totalorder %s21_s19, %s21_s19 }
   0x6   :  { %p249_p0 = scmp.ne.s32.totalorder %s21_s19, %s248_s20  ;;  %p254_p2 = scmp.lt.s32.totalorder %s248_s20, %s248_s20 }
   0x8   :  { %p255_p3 = por %p254_p2, %p253_p1 }
   0xa   :  { %p256_p4 = pnand %p255_p3, %p249_p0 }
   0xc   :  { %259 = shalt.err (!%p256_p4)
}
   0xd   :  { %s349_s21 = smov 128   ;;  %s350_s22 = smov 8  }
   0xe   :  { %26 = dma.hbm_to_vmem [thread:$0]  %s428_s0, 256, %s21_s19, [#allocation3], %s349_s21, %s349_s21, %s350_s22  }
   0xf   :  { %s351_s25 = smov [#allocation5]  }
  0x10   :  { %s32_s26 = sshll.u32 %s351_s25, 4  ;;  %s33_s26 = int_to_ptr.vmem [resolvable:$true] %s32_s26 }
  0x11   :  { %s268_s27 = scalar_lea.vmem %s33_s26, 256  ;;  %p273_p6 = scmp.lt.s32.totalorder %s33_s26, %s33_s26 }
  0x12   :  { %p269_p5 = scmp.ne.s32.totalorder %s33_s26, %s268_s27  ;;  %p274_p7 = scmp.lt.s32.totalorder %s268_s27, %s268_s27 }
  0x14   :  { %p275_p8 = por %p274_p7, %p273_p6 }
  0x16   :  { %p276_p9 = pnand %p275_p8, %p269_p5 }
  0x18   :  { %279 = shalt.err (!%p276_p9)
}
  0x19   :  { %s352_s28 = smov 64   ;;  %s353_s29 = smov 4  }
  0x1a   :  { %38 = dma.hbm_to_vmem [thread:$0]  %s429_s1, 256, %s33_s26, [#allocation6], %s352_s28, %s352_s28, %s353_s29  }
  0x1b   :  { %340 = dma.done.wait [#allocation3], 256  }
  0x1c   :  { %341 = vsyncadd [#allocation3], 4294967040 }
  0x1d   :  { %342 = dma.done.wait [#allocation6], 256  }
  0x1e   :  { %343 = vsyncadd [#allocation6], 4294967040  ;;  %v354_v0 = vmov 0.0   ;;  %vm355_vm0 = vmmov 0   ;;  %v238_v1 = vld [vmem:[#allocation5 + $0x8] sm:$0xff]   ;;  %v239_v2 = vld [vmem:[#allocation5] sm:$0xff]  }
  0x1f   :  { %218 = vmatprep.subr.bf16.mxu0 %v354_v0  ;;  %222 = vmatprep.mubr.msk.bf16.mxu0 %vm355_vm0, %v354_v0  ;;  %v48_v3 = vld [vmem:[#allocation2] sm:$0xff]  ;;  %v49_v4 = vld [vmem:[#allocation2 + $0x8] sm:$0xff]  ;;  %vm74_vm1 = vcmask 261120   ;;  %vm129_vm2 = vcmask 257024   ;;  %s356_s7 = smov 96   ;;  %s357_s8 = smov [#allocation7]  }
  0x20   :  { %219 = vmatpush3.bf16.msra.mxu0 %v238_v1  ;;  %v50_v5 = vpack.c.bf16 %v49_v4, %v48_v3  ;;  %v203_v6 = vld [vmem:[%s430_s2] ss:$0 sm:$0xff]  ;;  %s159_s9 = sshll.u32 %s357_s8, 4  ;;  %s160_s9 = int_to_ptr.vmem [resolvable:$true] %s159_s9 }
  0x21   :  { %220 = vmatprep.subr.bf16.mxu0 %v354_v0  ;;  %s280_s2 = scalar_lea.vmem %s160_s9, 128  ;;  %p285_p11 = scmp.lt.s32.totalorder %s160_s9, %s160_s9 }
  0x22   :  { %p281_p10 = scmp.ne.s32.totalorder %s160_s9, %s280_s2  ;;  %p286_p12 = scmp.lt.s32.totalorder %s280_s2, %s280_s2 }
  0x24   :  { %221 = vmatpush3.bf16.msra.mxu0 %v239_v2  ;;  %p287_p13 = por %p286_p12, %p285_p11 }
  0x26   :  { %p288_p0 = pnand %p287_p13, %p281_p10 }
  0x27   :  { %223 = vmatmul.mubr.msk.bf16.vlgmr.msra.gmra.mxu0 %vm74_vm1, %v50_v5 }
  0xe7   :  { %v112_v7 = vpop.f32.mrf.mxu0 }
  0xe8   :  { %v113_v8 = vadd.f32 %v203_v6, %v112_v7 }
  0xe9   :  { %v224_v9 = vpop.f32.mrf.mxu0 }
  0xea   :  { %v119_v10 = vmul.f32 0.35355338, %v113_v8  ;;  %v213_v11 = vpack.c.bf16 %v113_v8, %v113_v8 }
  0xeb   :  { %v115_v12 = vpop.f32.mrf.mxu0 }
  0xec   :  { %v211_v13 = vpack.c.bf16 %v119_v10, %v119_v10  ;;  %v116_v14 = vadd.f32 %v203_v6, %v115_v12  ;;  %146 = vrot.lane.b32.xlu1 %v213_v11, %s352_s28  ;;  %138 = vrot.lane.b32.xlu0 %v213_v11, %s356_s7 }
  0xed   :  { %v225_v15 = vpop.f32.mrf.mxu0 }
  0xee   :  { %v120_v16 = vmul.f32 0.35355338, %v116_v14  ;;  %v214_v17 = vpack.c.bf16 %v116_v14, %v116_v14  ;;  %130 = vst.msk [vmem:[#allocation7] sm:$0xf] %vm129_vm2, %v211_v13 }
  0xf0   :  { %v212_v18 = vpack.c.bf16 %v120_v16, %v120_v16  ;;  %148 = vrot.lane.b32.xlu1 %v214_v17, %s352_s28  ;;  %140 = vrot.lane.b32.xlu0 %v214_v17, %s356_s7 }
  0xf2   :  { %131 = vst.msk [vmem:[#allocation7 + $0x4] sm:$0xf] %vm129_vm2, %v212_v18 }
  0xf3   :  { %291 = shalt.err (!%p288_p0)
}
  0xf4   :  { %165 = dma.vmem_to_hbm [thread:$0]  %s160_s9, 128, %s431_s3, [#allocation4], %s352_s28, %s352_s28, %s353_s29  }
  0xf5   :  { %s358_s12 = smov [#allocation8]   ;;  %s359_s14 = smov [#allocation10]  }
  0xf6   :  { %s171_s13 = sshll.u32 %s358_s12, 4  ;;  %s183_s15 = sshll.u32 %s359_s14, 4  ;;  %s172_s13 = int_to_ptr.vmem [resolvable:$true] %s171_s13  ;;  %s184_s15 = int_to_ptr.vmem [resolvable:$true] %s183_s15 }
  0xf7   :  { %s300_s16 = scalar_lea.vmem %s172_s13, 128  ;;  %p305_p2 = scmp.lt.s32.totalorder %s172_s13, %s172_s13 }
  0xf8   :  { %p301_p1 = scmp.ne.s32.totalorder %s172_s13, %s300_s16  ;;  %p306_p3 = scmp.lt.s32.totalorder %s300_s16, %s300_s16 }
  0xfa   :  { %p307_p4 = por %p306_p3, %p305_p2 }
  0xfc   :  { %p308_p5 = pnand %p307_p4, %p301_p1 }
 0x15e   :  { %v147_v19 = vpop.permute.xlu1 %146  ;;  %v139_v20 = vpop.permute.xlu0 %138 }
 0x15f   :  { %152 = vst.msk [vmem:[#allocation10] sm:$0xf] %vm129_vm2, %v147_v19  ;;  %144 = vst.msk [vmem:[#allocation8] sm:$0xf] %vm129_vm2, %v139_v20 }
 0x162   :  { %v149_v21 = vpop.permute.xlu1 %148  ;;  %v141_v22 = vpop.permute.xlu0 %140 }
 0x163   :  { %153 = vst.msk [vmem:[#allocation10 + $0x4] sm:$0xf] %vm129_vm2, %v149_v21  ;;  %145 = vst.msk [vmem:[#allocation8 + $0x4] sm:$0xf] %vm129_vm2, %v141_v22 }
 0x164   :  { %311 = shalt.err (!%p308_p5)
}
 0x165   :  { %177 = dma.vmem_to_hbm [thread:$0]  %s172_s13, 128, %s432_s4, [#allocation9], %s352_s28, %s352_s28, %s353_s29  }
 0x166   :  { %s320_s18 = scalar_lea.vmem %s184_s15, 128  ;;  %p325_p7 = scmp.lt.s32.totalorder %s184_s15, %s184_s15 }
 0x167   :  { %p321_p6 = scmp.ne.s32.totalorder %s184_s15, %s320_s18  ;;  %p326_p8 = scmp.lt.s32.totalorder %s320_s18, %s320_s18 }
 0x169   :  { %p327_p9 = por %p326_p8, %p325_p7 }
 0x16b   :  { %p328_p10 = pnand %p327_p9, %p321_p6 }
 0x16d   :  { %331 = shalt.err (!%p328_p10)
}
 0x16e   :  { %189 = dma.vmem_to_hbm [thread:$0]  %s184_s15, 128, %s433_s5, [#allocation9], %s352_s28, %s352_s28, %s353_s29  }
 0x16f   :  { %344 = dma.done.wait [#allocation4], 128  }
 0x170   :  { %345 = vsyncadd [#allocation4], 4294967168 }
 0x171   :  { %346 = dma.done.wait [#allocation9], 256  }
 0x172   :  { %347 = vsyncadd [#allocation9], 4294967040 }
 0x173   :  { %199 = vsyncpa [#allocation3], 1 }
 0x174   :  { %200 = vsyncpa [#allocation6], 1 }
 0x175   :  { %201 = vsyncpa [#allocation4], 1 }
 0x176   :  { %202 = vsyncpa [#allocation9], 1 }

</bundles_post_ra>
